<compile_context>
chip_gen: v7x
topology: tpu7x:2x2x1
jax: 0.10.0
libtpu: 0.0.40
codegen_flags: <defaults>
</compile_context>

<pallas_src>
import functools

import jax
import jax.numpy as jnp
from jax.experimental import pallas as pl
from jax.experimental.pallas import tpu as pltpu


def _sigmoid_via_tanh(v):
    # sigmoid(v) == 0.5 * (tanh(v/2) + 1): one EUP op, no exp + reciprocal.
    return 0.5 * jnp.tanh(0.5 * v) + 0.5


def _convlstm_kernel(x_ref, c_ref, h_ref, wx_ref, wc_ref, wh_ref, s_ref, b_ref,
                     cnew_ref, hnew_ref, *, Bt, L, H, K):
    """One batch tile (Bt elements) per grid step, NCL layout.

    x_ref  : (Bt, Cx, L)   input
    c_ref  : (Bt, H,  L)   previous cell state (also feeds the conv)
    h_ref  : (Bt, H,  L)   previous hidden state
    wx_ref : (K, 4H, Cx)   conv weight taps acting on the x channels
    wc_ref : (K, 4H, H)    conv weight taps acting on the c channels
    wh_ref : (K, 4H, H)    conv weight taps acting on the h channels
    s_ref  : (K, L, L)     one-hot shift matrices with replicate clamping
    b_ref  : (4H, 1)       conv bias
    cnew_ref, hnew_ref : (Bt, H, L)
    """
    H4 = 4 * H

    # Hoisted once per grid step (not per batch element / not per tap).
    bias_acc = jnp.broadcast_to(b_ref[...].astype(jnp.float32), (H4, L))
    wx_k = [wx_ref[k] for k in range(K)]
    wc_k = [wc_ref[k] for k in range(K)]
    wh_k = [wh_ref[k] for k in range(K)]
    s_k = [s_ref[k] for k in range(K)]

    for b in range(Bt):                      # static, unrolled at trace time
        xb = x_ref[b]                        # (Cx, L)
        cb = c_ref[b]                        # (H, L)
        hb = h_ref[b]                        # (H, L)
        c_prev = cb.astype(jnp.float32)

        acc = bias_acc
        for k in range(K):                   # K static & small
            z = jnp.dot(wx_k[k], xb, preferred_element_type=jnp.float32)
            z += jnp.dot(wc_k[k], cb, preferred_element_type=jnp.float32)
            z += jnp.dot(wh_k[k], hb, preferred_element_type=jnp.float32)
            # Tap shift (with replicate boundary) folded into an MXU matmul:
            # (z @ s[k])[:, l] == z[:, clip(l + k - pad, 0, L-1)].
            acc += jnp.dot(z, s_k[k], preferred_element_type=jnp.float32)

        i_g = _sigmoid_via_tanh(acc[0 * H:1 * H, :])
        f_g = _sigmoid_via_tanh(acc[1 * H:2 * H, :])
        o_g = _sigmoid_via_tanh(acc[2 * H:3 * H, :])
        g_g = jnp.tanh(acc[3 * H:4 * H, :])

        c_new = f_g * c_prev + i_g * g_g
        h_new = o_g * jnp.tanh(c_new)

        cnew_ref[b] = c_new.astype(cnew_ref.dtype)
        hnew_ref[b] = h_new.astype(hnew_ref.dtype)


def conv1d_lstmc_cell(x, c, h, weight, bias, *, kernel_size):
    """Forward pass of Conv1d_LSTMCcell.

    x      : (B, input_dim, L)   NCL (PyTorch layout)
    c, h   : (B, hidden_dim, L)  NCL
    weight : (4*hidden_dim, input_dim + 2*hidden_dim, K)  (nn.Conv1d weight)
    bias   : (4*hidden_dim,)
    returns y, (c_new, h_new), all (B, hidden_dim, L); y is h_new.
    """
    B, Cx, L = x.shape
    H = c.shape[1]
    K = kernel_size
    assert K % 2 == 1, "kernel_size must be odd for 'same' output length"
    pad = K // 2
    Cin = Cx + 2 * H
    assert weight.shape == (4 * H, Cin, K)
    assert bias.shape == (4 * H,)
    assert c.shape == (B, H, L) and h.shape == (B, H, L)

    # --- tiny parameter rearrangements (negligible traffic) ---
    wx = jnp.transpose(weight[:, :Cx, :], (2, 0, 1))            # (K, 4H, Cx)
    wc = jnp.transpose(weight[:, Cx:Cx + H, :], (2, 0, 1))      # (K, 4H, H)
    wh = jnp.transpose(weight[:, Cx + H:, :], (2, 0, 1))        # (K, 4H, H)
    b2 = bias.reshape(4 * H, 1)

    # One-hot shift matrices implementing the replicate-padded conv taps.
    pos = jnp.arange(L)
    rows = pos[:, None]
    shift = jnp.stack(
        [(rows == jnp.clip(pos + (k - pad), 0, L - 1)[None, :])
         .astype(jnp.float32) for k in range(K)],
        axis=0)                                                  # (K, L, L)

    # --- batch tiling: several batch elements per grid step ---
    Bt = 1
    for cand in range(min(B, 8), 0, -1):
        if B % cand == 0:
            Bt = cand
            break
    nb = B // Bt

    kern = functools.partial(_convlstm_kernel, Bt=Bt, L=L, H=H, K=K)
    out_sds = jax.ShapeDtypeStruct((B, H, L), x.dtype)

    # TODO(synk): for very long section lengths L, add an L-tiling parallel
    # grid axis with a K//2 halo (per-tile shift matrices) to bound VMEM on
    # v7x and keep both TensorCores busy for small/odd B.
    c_new, h_new = pl.pallas_call(
        kern,
        out_shape=(out_sds, out_sds),
        grid_spec=pltpu.PrefetchScalarGridSpec(
            num_scalar_prefetch=0,
            grid=(nb,),
            in_specs=[
                pl.BlockSpec((Bt, Cx, L), lambda i: (i, 0, 0)),
                pl.BlockSpec((Bt, H, L), lambda i: (i, 0, 0)),
                pl.BlockSpec((Bt, H, L), lambda i: (i, 0, 0)),
                pl.BlockSpec((K, 4 * H, Cx), lambda i: (0, 0, 0)),
                pl.BlockSpec((K, 4 * H, H), lambda i: (0, 0, 0)),
                pl.BlockSpec((K, 4 * H, H), lambda i: (0, 0, 0)),
                pl.BlockSpec((K, L, L), lambda i: (0, 0, 0)),
                pl.BlockSpec((4 * H, 1), lambda i: (0, 0)),
            ],
            out_specs=(
                pl.BlockSpec((Bt, H, L), lambda i: (i, 0, 0)),
                pl.BlockSpec((Bt, H, L), lambda i: (i, 0, 0)),
            ),
        ),
        compiler_params=pltpu.CompilerParams(
            dimension_semantics=("parallel",)),
    )(x, c, h, wx, wc, wh, shift, b2)

    y = h_new  # y is h_new in the PyTorch module; no duplicated writeback.
    return y, (c_new, h_new)


def _reference(x, c, h, weight, bias, kernel_size):
    """Pure-JAX reference matching PyTorch semantics (replicate padding)."""
    pad = kernel_size // 2
    combined = jnp.concatenate([x, c, h], axis=1)             # (B, Cin, L)
    combined_p = jnp.pad(combined, ((0, 0), (0, 0), (pad, pad)), mode="edge")
    out = jax.lax.conv_general_dilated(
        combined_p, weight, window_strides=(1,), padding="VALID",
        dimension_numbers=("NCH", "OIH", "NCH"))
    out = out + bias[None, :, None]
    cc_i, cc_f, cc_o, cc_g = jnp.split(out, 4, axis=1)
    i = jax.nn.sigmoid(cc_i)
    f = jax.nn.sigmoid(cc_f)
    o = jax.nn.sigmoid(cc_o)
    g = jnp.tanh(cc_g)
    c_new = f * c + i * g
    h_new = o * jnp.tanh(c_new)
    return h_new, (c_new, h_new)


if __name__ == "__main__":
    # Small, forward-consistent shapes.
    B, input_dim, hidden_dim, L, K = 2, 4, 8, 16, 3
    Cin = input_dim + 2 * hidden_dim

    key = jax.random.PRNGKey(0)
    kx, kc, kh, kw, kb = jax.random.split(key, 5)

    x = jax.random.normal(kx, (B, input_dim, L), dtype=jnp.float32)
    c0 = jax.random.normal(kc, (B, hidden_dim, L), dtype=jnp.float32)
    h0 = jax.random.normal(kh, (B, hidden_dim, L), dtype=jnp.float32)

    # Deterministic synthetic conv parameters (same shapes as nn.Conv1d).
    weight = 0.1 * jax.random.normal(kw, (4 * hidden_dim, Cin, K),
                                     dtype=jnp.float32)
    bias = 0.1 * jax.random.normal(kb, (4 * hidden_dim,), dtype=jnp.float32)

    y, (c_new, h_new) = conv1d_lstmc_cell(x, c0, h0, weight, bias,
                                          kernel_size=K)
    jax.block_until_ready((y, c_new, h_new))

    y_ref, (c_ref, h_ref) = _reference(x, c0, h0, weight, bias, K)
    assert jnp.allclose(y, y_ref, atol=1e-4, rtol=1e-4)
    assert jnp.allclose(c_new, c_ref, atol=1e-4, rtol=1e-4)
    assert jnp.allclose(h_new, h_ref, atol=1e-4, rtol=1e-4)

    print("KERNEL_OK")
</pallas_src>

<mosaic_0001>
module attributes {stable_mosaic.version = 11 : i64} {
  func.func @_convlstm_kernel(%arg0: i32, %arg1: memref<2x4x16xf32, #tpu.memory_space<vmem>>, %arg2: memref<2x8x16xf32, #tpu.memory_space<vmem>>, %arg3: memref<2x8x16xf32, #tpu.memory_space<vmem>>, %arg4: memref<3x32x4xf32, #tpu.memory_space<vmem>>, %arg5: memref<3x32x8xf32, #tpu.memory_space<vmem>>, %arg6: memref<3x32x8xf32, #tpu.memory_space<vmem>>, %arg7: memref<3x16x16xf32, #tpu.memory_space<vmem>>, %arg8: memref<32x1xf32, #tpu.memory_space<vmem>>, %arg9: memref<2x8x16xf32, #tpu.memory_space<vmem>>, %arg10: memref<2x8x16xf32, #tpu.memory_space<vmem>>) attributes {dimension_semantics = [#tpu.dimension_semantics<parallel>], iteration_bounds = array<i64: 1>, scalar_prefetch = 0 : i64, scratch_operands = 0 : i64, tpu.core_type = #tpu.core_type<tc>, window_params = [{transform_indices = @transform_0, window_bounds = array<i64: 2, 4, 16>}, {transform_indices = @transform_1, window_bounds = array<i64: 2, 8, 16>}, {transform_indices = @transform_2, window_bounds = array<i64: 2, 8, 16>}, {pipeline_mode = #tpu.pipeline_mode<synchronous>, transform_indices = @transform_3, window_bounds = array<i64: 3, 32, 4>}, {pipeline_mode = #tpu.pipeline_mode<synchronous>, transform_indices = @transform_4, window_bounds = array<i64: 3, 32, 8>}, {pipeline_mode = #tpu.pipeline_mode<synchronous>, transform_indices = @transform_5, window_bounds = array<i64: 3, 32, 8>}, {pipeline_mode = #tpu.pipeline_mode<synchronous>, transform_indices = @transform_6, window_bounds = array<i64: 3, 16, 16>}, {pipeline_mode = #tpu.pipeline_mode<synchronous>, transform_indices = @transform_7, window_bounds = array<i64: 32, 1>}, {transform_indices = @transform_8, window_bounds = array<i64: 2, 8, 16>}, {transform_indices = @transform_9, window_bounds = array<i64: 2, 8, 16>}]} {
    %c0 = arith.constant 0 : index
    %c0_0 = arith.constant 0 : index
    %0 = vector.load %arg8[%c0, %c0_0] : memref<32x1xf32, #tpu.memory_space<vmem>>, vector<32x1xf32>
    %1 = vector.shape_cast %0 : vector<32x1xf32> to vector<32x1xf32>
    %2 = vector.broadcast %1 : vector<32x1xf32> to vector<32x16xf32>
    %c0_1 = arith.constant 0 : index
    %c0_2 = arith.constant 0 : index
    %c0_3 = arith.constant 0 : index
    %3 = vector.load %arg4[%c0_1, %c0_2, %c0_3] : memref<3x32x4xf32, #tpu.memory_space<vmem>>, vector<1x32x4xf32>
    %4 = vector.shape_cast %3 : vector<1x32x4xf32> to vector<32x4xf32>
    %c1 = arith.constant 1 : index
    %c0_4 = arith.constant 0 : index
    %c0_5 = arith.constant 0 : index
    %5 = vector.load %arg4[%c1, %c0_4, %c0_5] : memref<3x32x4xf32, #tpu.memory_space<vmem>>, vector<1x32x4xf32>
    %6 = vector.shape_cast %5 : vector<1x32x4xf32> to vector<32x4xf32>
    %c2 = arith.constant 2 : index
    %c0_6 = arith.constant 0 : index
    %c0_7 = arith.constant 0 : index
    %7 = vector.load %arg4[%c2, %c0_6, %c0_7] : memref<3x32x4xf32, #tpu.memory_space<vmem>>, vector<1x32x4xf32>
    %8 = vector.shape_cast %7 : vector<1x32x4xf32> to vector<32x4xf32>
    %c0_8 = arith.constant 0 : index
    %c0_9 = arith.constant 0 : index
    %c0_10 = arith.constant 0 : index
    %9 = vector.load %arg5[%c0_8, %c0_9, %c0_10] : memref<3x32x8xf32, #tpu.memory_space<vmem>>, vector<1x32x8xf32>
    %10 = vector.shape_cast %9 : vector<1x32x8xf32> to vector<32x8xf32>
    %c1_11 = arith.constant 1 : index
    %c0_12 = arith.constant 0 : index
    %c0_13 = arith.constant 0 : index
    %11 = vector.load %arg5[%c1_11, %c0_12, %c0_13] : memref<3x32x8xf32, #tpu.memory_space<vmem>>, vector<1x32x8xf32>
    %12 = vector.shape_cast %11 : vector<1x32x8xf32> to vector<32x8xf32>
    %c2_14 = arith.constant 2 : index
    %c0_15 = arith.constant 0 : index
    %c0_16 = arith.constant 0 : index
    %13 = vector.load %arg5[%c2_14, %c0_15, %c0_16] : memref<3x32x8xf32, #tpu.memory_space<vmem>>, vector<1x32x8xf32>
    %14 = vector.shape_cast %13 : vector<1x32x8xf32> to vector<32x8xf32>
    %c0_17 = arith.constant 0 : index
    %c0_18 = arith.constant 0 : index
    %c0_19 = arith.constant 0 : index
    %15 = vector.load %arg6[%c0_17, %c0_18, %c0_19] : memref<3x32x8xf32, #tpu.memory_space<vmem>>, vector<1x32x8xf32>
    %16 = vector.shape_cast %15 : vector<1x32x8xf32> to vector<32x8xf32>
    %c1_20 = arith.constant 1 : index
    %c0_21 = arith.constant 0 : index
    %c0_22 = arith.constant 0 : index
    %17 = vector.load %arg6[%c1_20, %c0_21, %c0_22] : memref<3x32x8xf32, #tpu.memory_space<vmem>>, vector<1x32x8xf32>
    %18 = vector.shape_cast %17 : vector<1x32x8xf32> to vector<32x8xf32>
    %c2_23 = arith.constant 2 : index
    %c0_24 = arith.constant 0 : index
    %c0_25 = arith.constant 0 : index
    %19 = vector.load %arg6[%c2_23, %c0_24, %c0_25] : memref<3x32x8xf32, #tpu.memory_space<vmem>>, vector<1x32x8xf32>
    %20 = vector.shape_cast %19 : vector<1x32x8xf32> to vector<32x8xf32>
    %c0_26 = arith.constant 0 : index
    %c0_27 = arith.constant 0 : index
    %c0_28 = arith.constant 0 : index
    %21 = vector.load %arg7[%c0_26, %c0_27, %c0_28] : memref<3x16x16xf32, #tpu.memory_space<vmem>>, vector<1x16x16xf32>
    %22 = vector.shape_cast %21 : vector<1x16x16xf32> to vector<16x16xf32>
    %c1_29 = arith.constant 1 : index
    %c0_30 = arith.constant 0 : index
    %c0_31 = arith.constant 0 : index
    %23 = vector.load %arg7[%c1_29, %c0_30, %c0_31] : memref<3x16x16xf32, #tpu.memory_space<vmem>>, vector<1x16x16xf32>
    %24 = vector.shape_cast %23 : vector<1x16x16xf32> to vector<16x16xf32>
    %c2_32 = arith.constant 2 : index
    %c0_33 = arith.constant 0 : index
    %c0_34 = arith.constant 0 : index
    %25 = vector.load %arg7[%c2_32, %c0_33, %c0_34] : memref<3x16x16xf32, #tpu.memory_space<vmem>>, vector<1x16x16xf32>
    %26 = vector.shape_cast %25 : vector<1x16x16xf32> to vector<16x16xf32>
    %c0_35 = arith.constant 0 : index
    %c0_36 = arith.constant 0 : index
    %c0_37 = arith.constant 0 : index
    %27 = vector.load %arg1[%c0_35, %c0_36, %c0_37] : memref<2x4x16xf32, #tpu.memory_space<vmem>>, vector<1x4x16xf32>
    %28 = vector.shape_cast %27 : vector<1x4x16xf32> to vector<4x16xf32>
    %c0_38 = arith.constant 0 : index
    %c0_39 = arith.constant 0 : index
    %c0_40 = arith.constant 0 : index
    %29 = vector.load %arg2[%c0_38, %c0_39, %c0_40] : memref<2x8x16xf32, #tpu.memory_space<vmem>>, vector<1x8x16xf32>
    %30 = vector.shape_cast %29 : vector<1x8x16xf32> to vector<8x16xf32>
    %c0_41 = arith.constant 0 : index
    %c0_42 = arith.constant 0 : index
    %c0_43 = arith.constant 0 : index
    %31 = vector.load %arg3[%c0_41, %c0_42, %c0_43] : memref<2x8x16xf32, #tpu.memory_space<vmem>>, vector<1x8x16xf32>
    %32 = vector.shape_cast %31 : vector<1x8x16xf32> to vector<8x16xf32>
    %cst = arith.constant dense<0.000000e+00> : vector<32x16xf32>
    %33 = tpu.matmul %4, %28, %cst {dimension_numbers = #tpu.dot_dimension_numbers<[1], [0], [0], [1], [0, 0, 1, 1], [], []>} : vector<32x4xf32>, vector<4x16xf32>, vector<32x16xf32> -> vector<32x16xf32>
    %cst_44 = arith.constant dense<0.000000e+00> : vector<32x16xf32>
    %34 = tpu.matmul %10, %30, %cst_44 {dimension_numbers = #tpu.dot_dimension_numbers<[1], [0], [0], [1], [0, 0, 1, 1], [], []>} : vector<32x8xf32>, vector<8x16xf32>, vector<32x16xf32> -> vector<32x16xf32>
    %35 = arith.addf %33, %34 : vector<32x16xf32>
    %cst_45 = arith.constant dense<0.000000e+00> : vector<32x16xf32>
    %36 = tpu.matmul %16, %32, %cst_45 {dimension_numbers = #tpu.dot_dimension_numbers<[1], [0], [0], [1], [0, 0, 1, 1], [], []>} : vector<32x8xf32>, vector<8x16xf32>, vector<32x16xf32> -> vector<32x16xf32>
    %37 = arith.addf %35, %36 : vector<32x16xf32>
    %cst_46 = arith.constant dense<0.000000e+00> : vector<32x16xf32>
    %38 = tpu.matmul %37, %22, %cst_46 {dimension_numbers = #tpu.dot_dimension_numbers<[1], [0], [0], [1], [0, 0, 1, 1], [], []>} : vector<32x16xf32>, vector<16x16xf32>, vector<32x16xf32> -> vector<32x16xf32>
    %39 = arith.addf %2, %38 : vector<32x16xf32>
    %cst_47 = arith.constant dense<0.000000e+00> : vector<32x16xf32>
    %40 = tpu.matmul %6, %28, %cst_47 {dimension_numbers = #tpu.dot_dimension_numbers<[1], [0], [0], [1], [0, 0, 1, 1], [], []>} : vector<32x4xf32>, vector<4x16xf32>, vector<32x16xf32> -> vector<32x16xf32>
    %cst_48 = arith.constant dense<0.000000e+00> : vector<32x16xf32>
    %41 = tpu.matmul %12, %30, %cst_48 {dimension_numbers = #tpu.dot_dimension_numbers<[1], [0], [0], [1], [0, 0, 1, 1], [], []>} : vector<32x8xf32>, vector<8x16xf32>, vector<32x16xf32> -> vector<32x16xf32>
    %42 = arith.addf %40, %41 : vector<32x16xf32>
    %cst_49 = arith.constant dense<0.000000e+00> : vector<32x16xf32>
    %43 = tpu.matmul %18, %32, %cst_49 {dimension_numbers = #tpu.dot_dimension_numbers<[1], [0], [0], [1], [0, 0, 1, 1], [], []>} : vector<32x8xf32>, vector<8x16xf32>, vector<32x16xf32> -> vector<32x16xf32>
    %44 = arith.addf %42, %43 : vector<32x16xf32>
    %cst_50 = arith.constant dense<0.000000e+00> : vector<32x16xf32>
    %45 = tpu.matmul %44, %24, %cst_50 {dimension_numbers = #tpu.dot_dimension_numbers<[1], [0], [0], [1], [0, 0, 1, 1], [], []>} : vector<32x16xf32>, vector<16x16xf32>, vector<32x16xf32> -> vector<32x16xf32>
    %46 = arith.addf %39, %45 : vector<32x16xf32>
    %cst_51 = arith.constant dense<0.000000e+00> : vector<32x16xf32>
    %47 = tpu.matmul %8, %28, %cst_51 {dimension_numbers = #tpu.dot_dimension_numbers<[1], [0], [0], [1], [0, 0, 1, 1], [], []>} : vector<32x4xf32>, vector<4x16xf32>, vector<32x16xf32> -> vector<32x16xf32>
    %cst_52 = arith.constant dense<0.000000e+00> : vector<32x16xf32>
    %48 = tpu.matmul %14, %30, %cst_52 {dimension_numbers = #tpu.dot_dimension_numbers<[1], [0], [0], [1], [0, 0, 1, 1], [], []>} : vector<32x8xf32>, vector<8x16xf32>, vector<32x16xf32> -> vector<32x16xf32>
    %49 = arith.addf %47, %48 : vector<32x16xf32>
    %cst_53 = arith.constant dense<0.000000e+00> : vector<32x16xf32>
    %50 = tpu.matmul %20, %32, %cst_53 {dimension_numbers = #tpu.dot_dimension_numbers<[1], [0], [0], [1], [0, 0, 1, 1], [], []>} : vector<32x8xf32>, vector<8x16xf32>, vector<32x16xf32> -> vector<32x16xf32>
    %51 = arith.addf %49, %50 : vector<32x16xf32>
    %cst_54 = arith.constant dense<0.000000e+00> : vector<32x16xf32>
    %52 = tpu.matmul %51, %26, %cst_54 {dimension_numbers = #tpu.dot_dimension_numbers<[1], [0], [0], [1], [0, 0, 1, 1], [], []>} : vector<32x16xf32>, vector<16x16xf32>, vector<32x16xf32> -> vector<32x16xf32>
    %53 = arith.addf %46, %52 : vector<32x16xf32>
    %54 = vector.extract_strided_slice %53 {offsets = [0, 0], sizes = [8, 16], strides = [1, 1]} : vector<32x16xf32> to vector<8x16xf32>
    %cst_55 = arith.constant 5.000000e-01 : f32
    %55 = vector.broadcast %cst_55 : f32 to vector<8x16xf32>
    %56 = arith.mulf %55, %54 : vector<8x16xf32>
    %57 = math.tanh %56 : vector<8x16xf32>
    %cst_56 = arith.constant 5.000000e-01 : f32
    %58 = vector.broadcast %cst_56 : f32 to vector<8x16xf32>
    %59 = arith.mulf %58, %57 : vector<8x16xf32>
    %cst_57 = arith.constant 5.000000e-01 : f32
    %60 = vector.broadcast %cst_57 : f32 to vector<8x16xf32>
    %61 = arith.addf %59, %60 : vector<8x16xf32>
    %62 = vector.extract_strided_slice %53 {offsets = [8, 0], sizes = [8, 16], strides = [1, 1]} : vector<32x16xf32> to vector<8x16xf32>
    %cst_58 = arith.constant 5.000000e-01 : f32
    %63 = vector.broadcast %cst_58 : f32 to vector<8x16xf32>
    %64 = arith.mulf %63, %62 : vector<8x16xf32>
    %65 = math.tanh %64 : vector<8x16xf32>
    %cst_59 = arith.constant 5.000000e-01 : f32
    %66 = vector.broadcast %cst_59 : f32 to vector<8x16xf32>
    %67 = arith.mulf %66, %65 : vector<8x16xf32>
    %cst_60 = arith.constant 5.000000e-01 : f32
    %68 = vector.broadcast %cst_60 : f32 to vector<8x16xf32>
    %69 = arith.addf %67, %68 : vector<8x16xf32>
    %70 = vector.extract_strided_slice %53 {offsets = [16, 0], sizes = [8, 16], strides = [1, 1]} : vector<32x16xf32> to vector<8x16xf32>
    %cst_61 = arith.constant 5.000000e-01 : f32
    %71 = vector.broadcast %cst_61 : f32 to vector<8x16xf32>
    %72 = arith.mulf %71, %70 : vector<8x16xf32>
    %73 = math.tanh %72 : vector<8x16xf32>
    %cst_62 = arith.constant 5.000000e-01 : f32
    %74 = vector.broadcast %cst_62 : f32 to vector<8x16xf32>
    %75 = arith.mulf %74, %73 : vector<8x16xf32>
    %cst_63 = arith.constant 5.000000e-01 : f32
    %76 = vector.broadcast %cst_63 : f32 to vector<8x16xf32>
    %77 = arith.addf %75, %76 : vector<8x16xf32>
    %78 = vector.extract_strided_slice %53 {offsets = [24, 0], sizes = [8, 16], strides = [1, 1]} : vector<32x16xf32> to vector<8x16xf32>
    %79 = math.tanh %78 : vector<8x16xf32>
    %80 = arith.mulf %69, %30 : vector<8x16xf32>
    %81 = arith.mulf %61, %79 : vector<8x16xf32>
    %82 = arith.addf %80, %81 : vector<8x16xf32>
    %83 = math.tanh %82 : vector<8x16xf32>
    %84 = arith.mulf %77, %83 : vector<8x16xf32>
    %c0_64 = arith.constant 0 : index
    %c0_65 = arith.constant 0 : index
    %c0_66 = arith.constant 0 : index
    %85 = vector.load %arg9[%c0_64, %c0_65, %c0_66] : memref<2x8x16xf32, #tpu.memory_space<vmem>>, vector<1x8x16xf32>
    %86 = vector.shape_cast %85 : vector<1x8x16xf32> to vector<8x16xf32>
    %87 = vector.shape_cast %82 : vector<8x16xf32> to vector<1x8x16xf32>
    tpu.vector_store %arg9[%c0_64, %c0_65, %c0_66], %87 {strides = array<i32>} : memref<2x8x16xf32, #tpu.memory_space<vmem>>, vector<1x8x16xf32>,
    %c0_67 = arith.constant 0 : index
    %c0_68 = arith.constant 0 : index
    %c0_69 = arith.constant 0 : index
    %88 = vector.load %arg10[%c0_67, %c0_68, %c0_69] : memref<2x8x16xf32, #tpu.memory_space<vmem>>, vector<1x8x16xf32>
    %89 = vector.shape_cast %88 : vector<1x8x16xf32> to vector<8x16xf32>
    %90 = vector.shape_cast %84 : vector<8x16xf32> to vector<1x8x16xf32>
    tpu.vector_store %arg10[%c0_67, %c0_68, %c0_69], %90 {strides = array<i32>} : memref<2x8x16xf32, #tpu.memory_space<vmem>>, vector<1x8x16xf32>,
    %c1_70 = arith.constant 1 : index
    %c0_71 = arith.constant 0 : index
    %c0_72 = arith.constant 0 : index
    %91 = vector.load %arg1[%c1_70, %c0_71, %c0_72] : memref<2x4x16xf32, #tpu.memory_space<vmem>>, vector<1x4x16xf32>
    %92 = vector.shape_cast %91 : vector<1x4x16xf32> to vector<4x16xf32>
    %c1_73 = arith.constant 1 : index
    %c0_74 = arith.constant 0 : index
    %c0_75 = arith.constant 0 : index
    %93 = vector.load %arg2[%c1_73, %c0_74, %c0_75] : memref<2x8x16xf32, #tpu.memory_space<vmem>>, vector<1x8x16xf32>
    %94 = vector.shape_cast %93 : vector<1x8x16xf32> to vector<8x16xf32>
    %c1_76 = arith.constant 1 : index
    %c0_77 = arith.constant 0 : index
    %c0_78 = arith.constant 0 : index
    %95 = vector.load %arg3[%c1_76, %c0_77, %c0_78] : memref<2x8x16xf32, #tpu.memory_space<vmem>>, vector<1x8x16xf32>
    %96 = vector.shape_cast %95 : vector<1x8x16xf32> to vector<8x16xf32>
    %cst_79 = arith.constant dense<0.000000e+00> : vector<32x16xf32>
    %97 = tpu.matmul %4, %92, %cst_79 {dimension_numbers = #tpu.dot_dimension_numbers<[1], [0], [0], [1], [0, 0, 1, 1], [], []>} : vector<32x4xf32>, vector<4x16xf32>, vector<32x16xf32> -> vector<32x16xf32>
    %cst_80 = arith.constant dense<0.000000e+00> : vector<32x16xf32>
    %98 = tpu.matmul %10, %94, %cst_80 {dimension_numbers = #tpu.dot_dimension_numbers<[1], [0], [0], [1], [0, 0, 1, 1], [], []>} : vector<32x8xf32>, vector<8x16xf32>, vector<32x16xf32> -> vector<32x16xf32>
    %99 = arith.addf %97, %98 : vector<32x16xf32>
    %cst_81 = arith.constant dense<0.000000e+00> : vector<32x16xf32>
    %100 = tpu.matmul %16, %96, %cst_81 {dimension_numbers = #tpu.dot_dimension_numbers<[1], [0], [0], [1], [0, 0, 1, 1], [], []>} : vector<32x8xf32>, vector<8x16xf32>, vector<32x16xf32> -> vector<32x16xf32>
    %101 = arith.addf %99, %100 : vector<32x16xf32>
    %cst_82 = arith.constant dense<0.000000e+00> : vector<32x16xf32>
    %102 = tpu.matmul %101, %22, %cst_82 {dimension_numbers = #tpu.dot_dimension_numbers<[1], [0], [0], [1], [0, 0, 1, 1], [], []>} : vector<32x16xf32>, vector<16x16xf32>, vector<32x16xf32> -> vector<32x16xf32>
    %103 = arith.addf %2, %102 : vector<32x16xf32>
    %cst_83 = arith.constant dense<0.000000e+00> : vector<32x16xf32>
    %104 = tpu.matmul %6, %92, %cst_83 {dimension_numbers = #tpu.dot_dimension_numbers<[1], [0], [0], [1], [0, 0, 1, 1], [], []>} : vector<32x4xf32>, vector<4x16xf32>, vector<32x16xf32> -> vector<32x16xf32>
    %cst_84 = arith.constant dense<0.000000e+00> : vector<32x16xf32>
    %105 = tpu.matmul %12, %94, %cst_84 {dimension_numbers = #tpu.dot_dimension_numbers<[1], [0], [0], [1], [0, 0, 1, 1], [], []>} : vector<32x8xf32>, vector<8x16xf32>, vector<32x16xf32> -> vector<32x16xf32>
    %106 = arith.addf %104, %105 : vector<32x16xf32>
    %cst_85 = arith.constant dense<0.000000e+00> : vector<32x16xf32>
    %107 = tpu.matmul %18, %96, %cst_85 {dimension_numbers = #tpu.dot_dimension_numbers<[1], [0], [0], [1], [0, 0, 1, 1], [], []>} : vector<32x8xf32>, vector<8x16xf32>, vector<32x16xf32> -> vector<32x16xf32>
    %108 = arith.addf %106, %107 : vector<32x16xf32>
    %cst_86 = arith.constant dense<0.000000e+00> : vector<32x16xf32>
    %109 = tpu.matmul %108, %24, %cst_86 {dimension_numbers = #tpu.dot_dimension_numbers<[1], [0], [0], [1], [0, 0, 1, 1], [], []>} : vector<32x16xf32>, vector<16x16xf32>, vector<32x16xf32> -> vector<32x16xf32>
    %110 = arith.addf %103, %109 : vector<32x16xf32>
    %cst_87 = arith.constant dense<0.000000e+00> : vector<32x16xf32>
    %111 = tpu.matmul %8, %92, %cst_87 {dimension_numbers = #tpu.dot_dimension_numbers<[1], [0], [0], [1], [0, 0, 1, 1], [], []>} : vector<32x4xf32>, vector<4x16xf32>, vector<32x16xf32> -> vector<32x16xf32>
    %cst_88 = arith.constant dense<0.000000e+00> : vector<32x16xf32>
    %112 = tpu.matmul %14, %94, %cst_88 {dimension_numbers = #tpu.dot_dimension_numbers<[1], [0], [0], [1], [0, 0, 1, 1], [], []>} : vector<32x8xf32>, vector<8x16xf32>, vector<32x16xf32> -> vector<32x16xf32>
    %113 = arith.addf %111, %112 : vector<32x16xf32>
    %cst_89 = arith.constant dense<0.000000e+00> : vector<32x16xf32>
    %114 = tpu.matmul %20, %96, %cst_89 {dimension_numbers = #tpu.dot_dimension_numbers<[1], [0], [0], [1], [0, 0, 1, 1], [], []>} : vector<32x8xf32>, vector<8x16xf32>, vector<32x16xf32> -> vector<32x16xf32>
    %115 = arith.addf %113, %114 : vector<32x16xf32>
    %cst_90 = arith.constant dense<0.000000e+00> : vector<32x16xf32>
    %116 = tpu.matmul %115, %26, %cst_90 {dimension_numbers = #tpu.dot_dimension_numbers<[1], [0], [0], [1], [0, 0, 1, 1], [], []>} : vector<32x16xf32>, vector<16x16xf32>, vector<32x16xf32> -> vector<32x16xf32>
    %117 = arith.addf %110, %116 : vector<32x16xf32>
    %118 = vector.extract_strided_slice %117 {offsets = [0, 0], sizes = [8, 16], strides = [1, 1]} : vector<32x16xf32> to vector<8x16xf32>
    %cst_91 = arith.constant 5.000000e-01 : f32
    %119 = vector.broadcast %cst_91 : f32 to vector<8x16xf32>
    %120 = arith.mulf %119, %118 : vector<8x16xf32>
    %121 = math.tanh %120 : vector<8x16xf32>
    %cst_92 = arith.constant 5.000000e-01 : f32
    %122 = vector.broadcast %cst_92 : f32 to vector<8x16xf32>
    %123 = arith.mulf %122, %121 : vector<8x16xf32>
    %cst_93 = arith.constant 5.000000e-01 : f32
    %124 = vector.broadcast %cst_93 : f32 to vector<8x16xf32>
    %125 = arith.addf %123, %124 : vector<8x16xf32>
    %126 = vector.extract_strided_slice %117 {offsets = [8, 0], sizes = [8, 16], strides = [1, 1]} : vector<32x16xf32> to vector<8x16xf32>
    %cst_94 = arith.constant 5.000000e-01 : f32
    %127 = vector.broadcast %cst_94 : f32 to vector<8x16xf32>
    %128 = arith.mulf %127, %126 : vector<8x16xf32>
    %129 = math.tanh %128 : vector<8x16xf32>
    %cst_95 = arith.constant 5.000000e-01 : f32
    %130 = vector.broadcast %cst_95 : f32 to vector<8x16xf32>
    %131 = arith.mulf %130, %129 : vector<8x16xf32>
    %cst_96 = arith.constant 5.000000e-01 : f32
    %132 = vector.broadcast %cst_96 : f32 to vector<8x16xf32>
    %133 = arith.addf %131, %132 : vector<8x16xf32>
    %134 = vector.extract_strided_slice %117 {offsets = [16, 0], sizes = [8, 16], strides = [1, 1]} : vector<32x16xf32> to vector<8x16xf32>
    %cst_97 = arith.constant 5.000000e-01 : f32
    %135 = vector.broadcast %cst_97 : f32 to vector<8x16xf32>
    %136 = arith.mulf %135, %134 : vector<8x16xf32>
    %137 = math.tanh %136 : vector<8x16xf32>
    %cst_98 = arith.constant 5.000000e-01 : f32
    %138 = vector.broadcast %cst_98 : f32 to vector<8x16xf32>
    %139 = arith.mulf %138, %137 : vector<8x16xf32>
    %cst_99 = arith.constant 5.000000e-01 : f32
    %140 = vector.broadcast %cst_99 : f32 to vector<8x16xf32>
    %141 = arith.addf %139, %140 : vector<8x16xf32>
    %142 = vector.extract_strided_slice %117 {offsets = [24, 0], sizes = [8, 16], strides = [1, 1]} : vector<32x16xf32> to vector<8x16xf32>
    %143 = math.tanh %142 : vector<8x16xf32>
    %144 = arith.mulf %133, %94 : vector<8x16xf32>
    %145 = arith.mulf %125, %143 : vector<8x16xf32>
    %146 = arith.addf %144, %145 : vector<8x16xf32>
    %147 = math.tanh %146 : vector<8x16xf32>
    %148 = arith.mulf %141, %147 : vector<8x16xf32>
    %c1_100 = arith.constant 1 : index
    %c0_101 = arith.constant 0 : index
    %c0_102 = arith.constant 0 : index
    %149 = vector.load %arg9[%c1_100, %c0_101, %c0_102] : memref<2x8x16xf32, #tpu.memory_space<vmem>>, vector<1x8x16xf32>
    %150 = vector.shape_cast %149 : vector<1x8x16xf32> to vector<8x16xf32>
    %151 = vector.shape_cast %146 : vector<8x16xf32> to vector<1x8x16xf32>
    tpu.vector_store %arg9[%c1_100, %c0_101, %c0_102], %151 {strides = array<i32>} : memref<2x8x16xf32, #tpu.memory_space<vmem>>, vector<1x8x16xf32>,
    %c1_103 = arith.constant 1 : index
    %c0_104 = arith.constant 0 : index
    %c0_105 = arith.constant 0 : index
    %152 = vector.load %arg10[%c1_103, %c0_104, %c0_105] : memref<2x8x16xf32, #tpu.memory_space<vmem>>, vector<1x8x16xf32>
    %153 = vector.shape_cast %152 : vector<1x8x16xf32> to vector<8x16xf32>
    %154 = vector.shape_cast %148 : vector<8x16xf32> to vector<1x8x16xf32>
    tpu.vector_store %arg10[%c1_103, %c0_104, %c0_105], %154 {strides = array<i32>} : memref<2x8x16xf32, #tpu.memory_space<vmem>>, vector<1x8x16xf32>,
    return
  }
  func.func @transform_0(%arg0: i32) -> (i32, i32, i32) {
    %c0_i32 = arith.constant 0 : i32
    %c0_i32_0 = arith.constant 0 : i32
    %c0_i32_1 = arith.constant 0 : i32
    return %arg0, %c0_i32, %c0_i32_0 : i32, i32, i32
  }
  func.func @transform_1(%arg0: i32) -> (i32, i32, i32) {
    %c0_i32 = arith.constant 0 : i32
    %c0_i32_0 = arith.constant 0 : i32
    %c0_i32_1 = arith.constant 0 : i32
    return %arg0, %c0_i32, %c0_i32_0 : i32, i32, i32
  }
  func.func @transform_2(%arg0: i32) -> (i32, i32, i32) {
    %c0_i32 = arith.constant 0 : i32
    %c0_i32_0 = arith.constant 0 : i32
    %c0_i32_1 = arith.constant 0 : i32
    return %arg0, %c0_i32, %c0_i32_0 : i32, i32, i32
  }
  func.func @transform_3(%arg0: i32) -> (i32, i32, i32) {
    %c0_i32 = arith.constant 0 : i32
    %c0_i32_0 = arith.constant 0 : i32
    %c0_i32_1 = arith.constant 0 : i32
    %c0_i32_2 = arith.constant 0 : i32
    return %c0_i32, %c0_i32_0, %c0_i32_1 : i32, i32, i32
  }
  func.func @transform_4(%arg0: i32) -> (i32, i32, i32) {
    %c0_i32 = arith.constant 0 : i32
    %c0_i32_0 = arith.constant 0 : i32
    %c0_i32_1 = arith.constant 0 : i32
    %c0_i32_2 = arith.constant 0 : i32
    return %c0_i32, %c0_i32_0, %c0_i32_1 : i32, i32, i32
  }
  func.func @transform_5(%arg0: i32) -> (i32, i32, i32) {
    %c0_i32 = arith.constant 0 : i32
    %c0_i32_0 = arith.constant 0 : i32
    %c0_i32_1 = arith.constant 0 : i32
    %c0_i32_2 = arith.constant 0 : i32
    return %c0_i32, %c0_i32_0, %c0_i32_1 : i32, i32, i32
  }
  func.func @transform_6(%arg0: i32) -> (i32, i32, i32) {
    %c0_i32 = arith.constant 0 : i32
    %c0_i32_0 = arith.constant 0 : i32
    %c0_i32_1 = arith.constant 0 : i32
    %c0_i32_2 = arith.constant 0 : i32
    return %c0_i32, %c0_i32_0, %c0_i32_1 : i32, i32, i32
  }
  func.func @transform_7(%arg0: i32) -> (i32, i32) {
    %c0_i32 = arith.constant 0 : i32
    %c0_i32_0 = arith.constant 0 : i32
    %c0_i32_1 = arith.constant 0 : i32
    return %c0_i32, %c0_i32_0 : i32, i32
  }
  func.func @transform_8(%arg0: i32) -> (i32, i32, i32) {
    %c0_i32 = arith.constant 0 : i32
    %c0_i32_0 = arith.constant 0 : i32
    %c0_i32_1 = arith.constant 0 : i32
    return %arg0, %c0_i32, %c0_i32_0 : i32, i32, i32
  }
  func.func @transform_9(%arg0: i32) -> (i32, i32, i32) {
    %c0_i32 = arith.constant 0 : i32
    %c0_i32_0 = arith.constant 0 : i32
    %c0_i32_1 = arith.constant 0 : i32
    return %arg0, %c0_i32, %c0_i32_0 : i32, i32, i32
  }
}

</mosaic_0001>

<bundles_post_ra>
// kernel: tpu_custom_call.1
= control target key start
LH: loop header
LB: loop body
LE: loop exit
PB: predicated region body
PF: predicated region fallthrough
CT: control target
= control target key end

     0   :  { %15 = vsyncpa [#allocation3], 0  ;;  %vm110_vm0 = vcmask 64512   ;;  %vm221_vm1 = vcmask 1043456   ;;  %vm208_vm2 = vcmask 31744   ;;  %s3585_s0 = inlined_call_operand.vmem [shape: f32[2,4,16], index: 0, kind: input, shape index: {}]   ;;  %s3586_s1 = inlined_call_operand.vmem [shape: f32[2,8,16], index: 1, kind: input, shape index: {}]   ;;  %s3587_s2 = inlined_call_operand.vmem [shape: f32[2,8,16], index: 2, kind: input, shape index: {}]   ;;  %s3588_s3 = inlined_call_operand.vmem [shape: f32[3,32,4], index: 3, kind: input, shape index: {}]   ;;  %s3589_s4 = inlined_call_operand.vmem [shape: f32[3,32,8], index: 4, kind: input, shape index: {}]   ;;  %s3590_s5 = inlined_call_operand.vmem [shape: f32[3,32,8], index: 5, kind: input, shape index: {}]   ;;  %s3591_s6 = inlined_call_operand.vmem [shape: f32[3,16,16], index: 6, kind: input, shape index: {}]   ;;  %s3592_s7 = inlined_call_operand.vmem [shape: f32[32,1], index: 7, kind: input, shape index: {}]   ;;  %s3593_s8 = inlined_call_operand.hbm [shape: f32[2,8,16], index: 8, kind: output, shape index: {0}]   ;;  %s3594_s9 = inlined_call_operand.hbm [shape: f32[2,8,16], index: 9, kind: output, shape index: {1}]  }
   0x1   :  { %v3160_v0 = vld [vmem:[%s3586_s1] sm:$0xff]  ;;  %v3170_v2 = vld [vmem:[%s3589_s4 + $0x8] sm:$0xff]  ;;  %v3183_v4 = vld [vmem:[%s3589_s4 + $0x10] sm:$0xff] }
   0x2   :  { %v3165_v1 = vld [vmem:[%s3589_s4] sm:$0xff]  ;;  %2727 = vmatprep.subr.mxu0 %v3160_v0  ;;  %v3202_v6 = vld [vmem:[%s3589_s4 + $0x18] sm:$0xff]  ;;  %v100_v9 = vld [vmem:[%s3591_s6 + $0x8] sm:$0xff] }
   0x3   :  { %2729 = vmatprep.mubr.msk.f32.mxu0 %vm110_vm0, %v3165_v1  ;;  %v3178_v3 = vld [vmem:[%s3585_s0] sm:$0xf]  ;;  %2728 = vmatpush3.msra.mxu0 %v3160_v0  ;;  %v58_v10 = vld [vmem:[%s3588_s3 + $0x8] sm:$0xff] }
   0x4   :  { %v3189_v5 = vld [vmem:[%s3587_s2] sm:$0xff]  ;;  %2730 = vmatmul.mubr.msk.f32.vlgmr.msra.gmra.mrb[0].mxu0 %vm110_vm0, %v3170_v2  ;;  %2735 = vmatprep.subr.msk.mxu0 %vm221_vm1, %v3178_v3 }
   0x5   :  { %2736 = vmatpush3.msk.msra.mxu0 %vm221_vm1, %v3178_v3  ;;  %2732 = vmatprep.mubr.msk.f32.mxu0 %vm110_vm0, %v3183_v4  ;;  %v3207_v7 = vld [vmem:[%s3588_s3] sm:$0xff] }
   0x6   :  { %2743 = vmatprep.subr.mxu0 %v3189_v5  ;;  %v99_v8 = vld [vmem:[%s3591_s6] sm:$0xff] }
   0x7   :  { %v3223_v11 = vpack.c.bf16 %v100_v9, %v99_v8 }
   0x8   :  { %2733 = vmatmul.mubr.msk.f32.gmra.mrb[2].mxu0 %vm110_vm0, %v3202_v6 }
   0x9   :  { %2737 = vmatprep.mubr.msk.f32.mxu0 %vm208_vm2, %v3207_v7 }
   0xa   :  { %16 = vsyncpa [#allocation5], 0  ;;  %v59_v12 = vld [vmem:[%s3588_s3 + $0x10] sm:$0xff]  ;;  %2932 = vmatprep.subr.bf16.mxu1 %v3223_v11  ;;  %v60_v13 = vld [vmem:[%s3588_s3 + $0x18] sm:$0xff]  ;;  %vm411_vm3 = vcmask 130048  }
   0xb   :  { %2934 = vmatpush3.bf16.msra.mxu1 %v3223_v11  ;;  %v85_v14 = vld [vmem:[%s3590_s5] sm:$0xff]  ;;  %v86_v15 = vld [vmem:[%s3590_s5 + $0x8] sm:$0xff]  ;;  %v87_v16 = vld [vmem:[%s3590_s5 + $0x10] sm:$0xff] }
   0xc   :  { %2738 = vmatmul.mubr.msk.f32.vlgmr.msra.gmra.mrb[0].mxu0 %vm208_vm2, %v58_v10  ;;  %2761 = vmatprep.subr.mxu1 %v3160_v0  ;;  %v88_v17 = vld [vmem:[%s3590_s5 + $0x18] sm:$0xff]  ;;  %v2480_v18 = vld [vmem:[%s3589_s4 + $0x40] sm:$0xff]  ;;  %v2481_v19 = vld [vmem:[%s3589_s4 + $0x48] sm:$0xff] }
   0xd   :  { %2744 = vmatpush3.msra.mxu0 %v3189_v5  ;;  %2740 = vmatprep.mubr.msk.f32.mxu0 %vm208_vm2, %v59_v12  ;;  %v2482_v20 = vld [vmem:[%s3589_s4 + $0x50] sm:$0xff]  ;;  %v2483_v21 = vld [vmem:[%s3589_s4 + $0x58] sm:$0xff]  ;;  %v2472_v22 = vld [vmem:[%s3588_s3 + $0x40] sm:$0xff] }
   0xe   :  { %2795 = vmatprep.subr.mxu0 %v3160_v0  ;;  %v2473_v23 = vld [vmem:[%s3588_s3 + $0x48] sm:$0xff]  ;;  %v2474_v24 = vld [vmem:[%s3588_s3 + $0x50] sm:$0xff]  ;;  %v2475_v25 = vld [vmem:[%s3588_s3 + $0x58] sm:$0xff] }
   0xf   :  { %v2488_v26 = vld [vmem:[%s3590_s5 + $0x40] sm:$0xff]  ;;  %v2489_v27 = vld [vmem:[%s3590_s5 + $0x48] sm:$0xff]  ;;  %v2490_v28 = vld [vmem:[%s3590_s5 + $0x50] sm:$0xff] }
  0x10   :  { %2741 = vmatmul.mubr.msk.f32.gmra.mrb[2].mxu0 %vm208_vm2, %v60_v13  ;;  %v2491_v29 = vld [vmem:[%s3590_s5 + $0x58] sm:$0xff]  ;;  %v3313_v30 = vld [vmem:[%s3586_s1 + $0x8] sm:$0xff]  ;;  %v3328_v31 = vld [vmem:[%s3585_s0 + $0x4] sm:$0xf] }
  0x11   :  { %2745 = vmatprep.mubr.msk.f32.mxu0 %vm110_vm0, %v85_v14  ;;  %v3342_v32 = vld [vmem:[%s3587_s2 + $0x8] sm:$0xff]  ;;  %v3376_v37 = vld [vmem:[%s3589_s4 + $0x20] sm:$0xff]  ;;  %v3392_v39 = vld [vmem:[%s3589_s4 + $0x30] sm:$0xff] }
  0x12   :  { %v3387_v38 = vld [vmem:[%s3589_s4 + $0x28] sm:$0xff]  ;;  %v3403_v40 = vld [vmem:[%s3589_s4 + $0x38] sm:$0xff]  ;;  %v3408_v41 = vld [vmem:[%s3588_s3 + $0x20] sm:$0xff] }
  0x13   :  { %v2492_v42 = vld [vmem:[%s3591_s6 + $0x10] sm:$0xff]  ;;  %v2493_v43 = vld [vmem:[%s3591_s6 + $0x18] sm:$0xff]  ;;  %v3424_v44 = vld [vmem:[%s3588_s3 + $0x28] sm:$0xff] }
  0x14   :  { %2746 = vmatmul.mubr.msk.f32.vlgmr.msra.gmra.mrb[0].mxu0 %vm110_vm0, %v86_v15  ;;  %v3429_v45 = vld [vmem:[%s3588_s3 + $0x30] sm:$0xff]  ;;  %v3431_v46 = vpack.c.bf16 %v2493_v43, %v2492_v42  ;;  %v3441_v47 = vld [vmem:[%s3588_s3 + $0x38] sm:$0xff]  ;;  %v3446_v48 = vld [vmem:[%s3590_s5 + $0x20] sm:$0xff] }
  0x15   :  { %2748 = vmatprep.mubr.msk.f32.mxu0 %vm110_vm0, %v87_v16  ;;  %2796 = vmatpush3.msra.mxu0 %v3160_v0  ;;  %v3456_v49 = vld [vmem:[%s3590_s5 + $0x28] sm:$0xff]  ;;  %v3461_v50 = vld [vmem:[%s3590_s5 + $0x30] sm:$0xff]  ;;  %v3470_v51 = vld [vmem:[%s3590_s5 + $0x38] sm:$0xff] }
  0x16   :  { %2803 = vmatprep.subr.msk.mxu0 %vm221_vm1, %v3178_v3  ;;  %v2494_v58 = vld [vmem:[%s3591_s6 + $0x20] sm:$0xff]  ;;  %v2495_v59 = vld [vmem:[%s3591_s6 + $0x28] sm:$0xff] }
  0x17   :  { %v3481_v61 = vpack.c.bf16 %v2495_v59, %v2494_v58  ;;  %v33_v63 = vld [vmem:[%s3592_s7] sm:$0xff] }
  0x18   :  { %2749 = vmatmul.mubr.msk.f32.gmra.mrb[2].mxu0 %vm110_vm0, %v88_v17 }
  0x19   :  { %2797 = vmatprep.mubr.msk.f32.mxu0 %vm110_vm0, %v2480_v18 }
  0x1c   :  { %2798 = vmatmul.mubr.msk.f32.vlgmr.msra.gmra.mrb[4].mxu0 %vm110_vm0, %v2481_v19 }
  0x1d   :  { %2800 = vmatprep.mubr.msk.f32.mxu0 %vm110_vm0, %v2482_v20  ;;  %2804 = vmatpush3.msk.msra.mxu0 %vm221_vm1, %v3178_v3 }
  0x1e   :  { %2811 = vmatprep.subr.mxu0 %v3189_v5 }
  0x20   :  { %2801 = vmatmul.mubr.msk.f32.gmra.mrb[6].mxu0 %vm110_vm0, %v2483_v21 }
  0x21   :  { %2805 = vmatprep.mubr.msk.f32.mxu0 %vm208_vm2, %v2472_v22 }
  0x24   :  { %2806 = vmatmul.mubr.msk.f32.vlgmr.msra.gmra.mrb[4].mxu0 %vm208_vm2, %v2473_v23 }
  0x25   :  { %2808 = vmatprep.mubr.msk.f32.mxu0 %vm208_vm2, %v2474_v24  ;;  %2812 = vmatpush3.msra.mxu0 %v3189_v5 }
  0x26   :  { %2829 = vmatprep.subr.mxu0 %v3313_v30 }
  0x28   :  { %2809 = vmatmul.mubr.msk.f32.gmra.mrb[6].mxu0 %vm208_vm2, %v2475_v25 }
  0x29   :  { %2813 = vmatprep.mubr.msk.f32.mxu0 %vm110_vm0, %v2488_v26 }
  0x2c   :  { %2814 = vmatmul.mubr.msk.f32.vlgmr.msra.gmra.mrb[4].mxu0 %vm110_vm0, %v2489_v27 }
  0x2d   :  { %2816 = vmatprep.mubr.msk.f32.mxu0 %vm110_vm0, %v2490_v28  ;;  %2830 = vmatpush3.msra.mxu0 %v3313_v30 }
  0x2e   :  { %2837 = vmatprep.subr.msk.mxu0 %vm221_vm1, %v3328_v31 }
  0x30   :  { %2817 = vmatmul.mubr.msk.f32.gmra.mrb[6].mxu0 %vm110_vm0, %v2491_v29 }
  0x31   :  { %2831 = vmatprep.mubr.msk.f32.mxu0 %vm110_vm0, %v3165_v1  ;;  %v36_v1 = vld [vmem:[%s3592_s7 + $0x18] sm:$0xff] }
  0x34   :  { %2832 = vmatmul.mubr.msk.f32.vlgmr.msra.gmra.mrb[8].mxu0 %vm110_vm0, %v3170_v2  ;;  %v3102_v2 = vmov 0  }
  0x35   :  { %2834 = vmatprep.mubr.msk.f32.mxu0 %vm110_vm0, %v3183_v4  ;;  %2838 = vmatpush3.msk.msra.mxu0 %vm221_vm1, %v3328_v31  ;;  %v35_v4 = vld [vmem:[%s3592_s7 + $0x10] sm:$0xff] }
  0x36   :  { %2845 = vmatprep.subr.mxu0 %v3342_v32  ;;  %3032 = vset.pattern.permute.xlu0 %v3102_v2 }
  0x37   :  { %3033 = vset.pattern.permute.xlu1 %v3102_v2  ;;  %39 = vperm.xlu0 %3032, %v33_v63  }
  0x38   :  { %2835 = vmatmul.mubr.msk.f32.gmra.mrb[10].mxu0 %vm110_vm0, %v3202_v6  ;;  %54 = vperm.xlu1 %3033, %v36_v1  }
  0x39   :  { %2839 = vmatprep.mubr.msk.f32.mxu0 %vm208_vm2, %v3207_v7 }
  0x3c   :  { %2840 = vmatmul.mubr.msk.f32.vlgmr.msra.gmra.mrb[8].mxu0 %vm208_vm2, %v58_v10  ;;  %49 = vperm.xlu1 %3033, %v35_v4  }
  0x3d   :  { %2842 = vmatprep.mubr.msk.f32.mxu0 %vm208_vm2, %v59_v12  ;;  %2846 = vmatpush3.msra.mxu0 %v3342_v32 }
  0x3e   :  { %2897 = vmatprep.subr.mxu0 %v3313_v30 }
  0x40   :  { %2843 = vmatmul.mubr.msk.f32.gmra.mrb[10].mxu0 %vm208_vm2, %v60_v13 }
  0x41   :  { %2847 = vmatprep.mubr.msk.f32.mxu0 %vm110_vm0, %v85_v14 }
  0x44   :  { %2848 = vmatmul.mubr.msk.f32.vlgmr.msra.gmra.mrb[8].mxu0 %vm110_vm0, %v86_v15 }
  0x45   :  { %2850 = vmatprep.mubr.msk.f32.mxu0 %vm110_vm0, %v87_v16  ;;  %2898 = vmatpush3.msra.mxu0 %v3313_v30 }
  0x46   :  { %2905 = vmatprep.subr.msk.mxu0 %vm221_vm1, %v3328_v31 }
  0x48   :  { %2851 = vmatmul.mubr.msk.f32.gmra.mrb[10].mxu0 %vm110_vm0, %v88_v17 }
  0x49   :  { %2899 = vmatprep.mubr.msk.f32.mxu0 %vm110_vm0, %v2480_v18 }
  0x4c   :  { %2900 = vmatmul.mubr.msk.f32.vlgmr.msra.gmra.mrb[12].mxu0 %vm110_vm0, %v2481_v19 }
  0x4d   :  { %2902 = vmatprep.mubr.msk.f32.mxu0 %vm110_vm0, %v2482_v20  ;;  %2906 = vmatpush3.msk.msra.mxu0 %vm221_vm1, %v3328_v31 }
  0x4e   :  { %2913 = vmatprep.subr.mxu0 %v3342_v32 }
  0x50   :  { %2903 = vmatmul.mubr.msk.f32.gmra.mrb[14].mxu0 %vm110_vm0, %v2483_v21 }
  0x51   :  { %2907 = vmatprep.mubr.msk.f32.mxu0 %vm208_vm2, %v2472_v22 }
  0x54   :  { %2908 = vmatmul.mubr.msk.f32.vlgmr.msra.gmra.mrb[12].mxu0 %vm208_vm2, %v2473_v23 }
  0x55   :  { %2910 = vmatprep.mubr.msk.f32.mxu0 %vm208_vm2, %v2474_v24  ;;  %2914 = vmatpush3.msra.mxu0 %v3342_v32 }
  0x58   :  { %2911 = vmatmul.mubr.msk.f32.gmra.mrb[14].mxu0 %vm208_vm2, %v2475_v25 }
  0x59   :  { %2915 = vmatprep.mubr.msk.f32.mxu0 %vm110_vm0, %v2488_v26 }
  0x5c   :  { %2916 = vmatmul.mubr.msk.f32.vlgmr.msra.gmra.mrb[12].mxu0 %vm110_vm0, %v2489_v27 }
  0x5d   :  { %2918 = vmatprep.mubr.msk.f32.mxu0 %vm110_vm0, %v2490_v28 }
  0x60   :  { %2919 = vmatmul.mubr.msk.f32.gmra.mrb[14].mxu0 %vm110_vm0, %v2491_v29 }
  0xb6   :  { %v40_v13 = vpop.permute.xlu0 %39 }
  0xb7   :  { %v55_v16 = vpop.permute.xlu1 %54 }
  0xbb   :  { %v50_v25 = vpop.permute.xlu1 %49 }
  0xe7   :  { %v2747_v33 = vpop.f32.mrb[0].mxu0 }
  0xe8   :  { %v388_v34 = vpop.f32.mrb[1].mxu0 }
  0xe9   :  { %2755 = vmatprep.mubr.msk.f32.mxu1 %vm411_vm3, %v388_v34 }
  0xea   :  { %2756 = vmatmul.mubr.msk.f32.vlgmr.msra.gmra.mrb[0].mxu1 %vm411_vm3, %v2747_v33 }
  0xeb   :  { %v2750_v35 = vpop.f32.mrb[2].mxu0  ;;  %2762 = vmatpush3.msra.mxu1 %v3160_v0 }
  0xec   :  { %v398_v36 = vpop.f32.mrb[3].mxu0  ;;  %2769 = vmatprep.subr.msk.mxu1 %vm221_vm1, %v3178_v3 }
  0xed   :  { %2758 = vmatprep.mubr.msk.f32.mxu1 %vm411_vm3, %v398_v36 }
  0xee   :  { %2759 = vmatmul.mubr.msk.f32.gmra.mrb[2].mxu1 %vm411_vm3, %v2750_v35 }
  0xef   :  { %2763 = vmatprep.mubr.msk.f32.mxu1 %vm110_vm0, %v3376_v37 }
  0xf2   :  { %2764 = vmatmul.mubr.msk.f32.vlgmr.msra.gmra.mrb[4].mxu1 %vm110_vm0, %v3387_v38 }
  0xf3   :  { %2770 = vmatpush3.msk.msra.mxu1 %vm221_vm1, %v3178_v3  ;;  %2766 = vmatprep.mubr.msk.f32.mxu1 %vm110_vm0, %v3392_v39  ;;  %v34_v3 = vld [vmem:[%s3592_s7 + $0x8] sm:$0xff]  ;;  %s3103_s7 = smov [#allocation2]  }
  0xf4   :  { %2777 = vmatprep.subr.mxu1 %v3189_v5  ;;  %44 = vperm.xlu0 %3032, %v34_v3   ;;  %s2441_s19 = sshll.u32 %s3103_s7, 4  ;;  %s2442_s19 = int_to_ptr.vmem [resolvable:$true] %s2441_s19 }
  0xf5   :  { %s3054_s20 = scalar_lea.vmem %s2442_s19, 256  ;;  %p3059_p1 = scmp.lt.s32.totalorder %s2442_s19, %s2442_s19 }
  0xf6   :  { %2767 = vmatmul.mubr.msk.f32.gmra.mrb[6].mxu1 %vm110_vm0, %v3403_v40  ;;  %p3055_p0 = scmp.ne.s32.totalorder %s2442_s19, %s3054_s20  ;;  %p3060_p2 = scmp.lt.s32.totalorder %s3054_s20, %s3054_s20 }
  0xf7   :  { %2771 = vmatprep.mubr.msk.f32.mxu1 %vm208_vm2, %v3408_v41 }
  0xf8   :  { %p3061_p3 = por %p3060_p2, %p3059_p1 }
  0xfa   :  { %2772 = vmatmul.mubr.msk.f32.vlgmr.msra.gmra.mrb[4].mxu1 %vm208_vm2, %v3424_v44  ;;  %p3062_p4 = pnand %p3061_p3, %p3055_p0 }
  0xfb   :  { %2778 = vmatpush3.msra.mxu1 %v3189_v5  ;;  %2774 = vmatprep.mubr.msk.f32.mxu1 %vm208_vm2, %v3429_v45 }
  0xfc   :  { %2936 = vmatprep.subr.bf16.mxu1 %v3431_v46 }
  0xfe   :  { %2775 = vmatmul.mubr.msk.f32.gmra.mrb[6].mxu1 %vm208_vm2, %v3441_v47 }
  0xff   :  { %2779 = vmatprep.mubr.msk.f32.mxu1 %vm110_vm0, %v3446_v48  ;;  %v2815_v52 = vpop.f32.mrb[4].mxu0 }
 0x100   :  { %v1181_v53 = vpop.f32.mrb[5].mxu0 }
 0x102   :  { %2780 = vmatmul.mubr.msk.f32.vlgmr.msra.gmra.mrb[4].mxu1 %vm110_vm0, %v3456_v49 }
 0x103   :  { %2782 = vmatprep.mubr.msk.f32.mxu1 %vm110_vm0, %v3461_v50  ;;  %2938 = vmatpush3.bf16.msra.mxu1 %v3431_v46  ;;  %v2818_v54 = vpop.f32.mrb[6].mxu0 }
 0x104   :  { %v1191_v55 = vpop.f32.mrb[7].mxu0  ;;  %2940 = vmatprep.subr.bf16.mxu1 %v3481_v61 }
 0x106   :  { %2783 = vmatmul.mubr.msk.f32.gmra.mrb[6].mxu1 %vm110_vm0, %v3470_v51 }
 0x117   :  { %v2849_v56 = vpop.f32.mrb[8].mxu0 }
 0x118   :  { %v1570_v57 = vpop.f32.mrb[9].mxu0 }
 0x11b   :  { %v2852_v60 = vpop.f32.mrb[10].mxu0 }
 0x11c   :  { %v1580_v62 = vpop.f32.mrb[11].mxu0 }
 0x12f   :  { %v2917_v9 = vpop.f32.mrb[12].mxu0 }
 0x130   :  { %v2290_v10 = vpop.f32.mrb[13].mxu0 }
 0x173   :  { %v45_v14 = vpop.permute.xlu0 %44 }
 0x1d5   :  { %v2781_v5 = vpop.f32.mrb[4].mxu1 }
 0x1d6   :  { %v785_v6 = vpop.f32.mrb[5].mxu1 }
 0x1d7   :  { %2789 = vmatprep.mubr.msk.f32.mxu1 %vm411_vm3, %v785_v6 }
 0x1d8   :  { %2790 = vmatmul.mubr.msk.f32.vlgmr.msra.gmra.mrb[0].mxu1 %vm411_vm3, %v2781_v5 }
 0x1d9   :  { %v2784_v7 = vpop.f32.mrb[6].mxu1  ;;  %2942 = vmatpush3.bf16.msra.mxu1 %v3481_v61 }
 0x1da   :  { %v795_v8 = vpop.f32.mrb[7].mxu1  ;;  %2944 = vmatprep.subr.bf16.mxu1 %v3223_v11 }
 0x1db   :  { %2792 = vmatprep.mubr.msk.f32.mxu1 %vm411_vm3, %v795_v8 }
 0x1dc   :  { %2793 = vmatmul.mubr.msk.f32.gmra.mrb[2].mxu1 %vm411_vm3, %v2784_v7 }
 0x1dd   :  { %2823 = vmatprep.mubr.msk.f32.mxu1 %vm411_vm3, %v1181_v53 }
 0x1e0   :  { %2824 = vmatmul.mubr.msk.f32.vlgmr.msra.gmra.mrb[0].mxu1 %vm411_vm3, %v2815_v52 }
 0x1e1   :  { %2826 = vmatprep.mubr.msk.f32.mxu1 %vm411_vm3, %v1191_v55  ;;  %2946 = vmatpush3.bf16.msra.mxu1 %v3223_v11  ;;  %v2920_v11 = vpop.f32.mrb[14].mxu0 }
 0x1e2   :  { %2863 = vmatprep.subr.mxu1 %v3313_v30  ;;  %v2300_v12 = vpop.f32.mrb[15].mxu0 }
 0x1e4   :  { %2827 = vmatmul.mubr.msk.f32.gmra.mrb[2].mxu1 %vm411_vm3, %v2818_v54 }
 0x1e5   :  { %2857 = vmatprep.mubr.msk.f32.mxu1 %vm411_vm3, %v1570_v57 }
 0x1e8   :  { %2858 = vmatmul.mubr.msk.f32.vlgmr.msra.gmra.mrb[8].mxu1 %vm411_vm3, %v2849_v56 }
 0x1e9   :  { %2860 = vmatprep.mubr.msk.f32.mxu1 %vm411_vm3, %v1580_v62  ;;  %2864 = vmatpush3.msra.mxu1 %v3313_v30 }
 0x1ea   :  { %2871 = vmatprep.subr.msk.mxu1 %vm221_vm1, %v3328_v31 }
 0x1ec   :  { %2861 = vmatmul.mubr.msk.f32.gmra.mrb[10].mxu1 %vm411_vm3, %v2852_v60 }
 0x1ed   :  { %2865 = vmatprep.mubr.msk.f32.mxu1 %vm110_vm0, %v3376_v37 }
 0x1f0   :  { %2866 = vmatmul.mubr.msk.f32.vlgmr.msra.gmra.mrb[12].mxu1 %vm110_vm0, %v3387_v38 }
 0x1f1   :  { %2872 = vmatpush3.msk.msra.mxu1 %vm221_vm1, %v3328_v31  ;;  %2868 = vmatprep.mubr.msk.f32.mxu1 %vm110_vm0, %v3392_v39 }
 0x1f2   :  { %2879 = vmatprep.subr.mxu1 %v3342_v32 }
 0x1f4   :  { %2869 = vmatmul.mubr.msk.f32.gmra.mrb[14].mxu1 %vm110_vm0, %v3403_v40 }
 0x1f5   :  { %2873 = vmatprep.mubr.msk.f32.mxu1 %vm208_vm2, %v3408_v41 }
 0x1f8   :  { %2874 = vmatmul.mubr.msk.f32.vlgmr.msra.gmra.mrb[12].mxu1 %vm208_vm2, %v3424_v44 }
 0x1f9   :  { %2880 = vmatpush3.msra.mxu1 %v3342_v32  ;;  %2876 = vmatprep.mubr.msk.f32.mxu1 %vm208_vm2, %v3429_v45 }
 0x1fa   :  { %2948 = vmatprep.subr.bf16.mxu1 %v3431_v46 }
 0x1fc   :  { %2877 = vmatmul.mubr.msk.f32.gmra.mrb[14].mxu1 %vm208_vm2, %v3441_v47 }
 0x1fd   :  { %2881 = vmatprep.mubr.msk.f32.mxu1 %vm110_vm0, %v3446_v48 }
 0x200   :  { %2882 = vmatmul.mubr.msk.f32.vlgmr.msra.gmra.mrb[12].mxu1 %vm110_vm0, %v3456_v49 }
 0x201   :  { %2884 = vmatprep.mubr.msk.f32.mxu1 %vm110_vm0, %v3461_v50  ;;  %2950 = vmatpush3.bf16.msra.mxu1 %v3431_v46 }
 0x202   :  { %2952 = vmatprep.subr.bf16.mxu1 %v3481_v61 }
 0x204   :  { %2885 = vmatmul.mubr.msk.f32.gmra.mrb[14].mxu1 %vm110_vm0, %v3470_v51 }
 0x2b3   :  { %v2825_v15 = vpop.f32.mrb[0].mxu1 }
 0x2b4   :  { %v2955_v17 = vadd.f32 %v2825_v15, %v45_v14  ;;  %v1282_v18 = vpop.f32.mrb[1].mxu1 }
 0x2b5   :  { %v2956_v19 = vadd.f32 %v1282_v18, %v40_v13 }
 0x2b6   :  { %v1309_v20 = vmul.f32 0.5, %v2955_v17 }
 0x2b7   :  { %v1305_v21 = vmul.f32 0.5, %v2956_v19  ;;  %v2828_v22 = vpop.f32.mrb[2].mxu1 }
 0x2b8   :  { %3034 = vtanh.f32 %v1309_v20  ;;  %v1292_v23 = vpop.f32.mrb[3].mxu1  ;;  %v2957_v24 = vadd.f32 %v2828_v22, %v55_v16 }
 0x2b9   :  { %3036 = vtanh.f32 %v1305_v21  ;;  %v2958_v26 = vadd.f32 %v1292_v23, %v50_v25 }
 0x2ba   :  { %3038 = vtanh.f32 %v2957_v24 }
 0x2bb   :  { %v1313_v27 = vmul.f32 0.5, %v2958_v26 }
 0x2bd   :  { %3040 = vtanh.f32 %v1313_v27 }
 0x2c2   :  { %v3035_v28 = vpop.eup %3034 }
 0x2c3   :  { %v3037_v29 = vpop.eup %3036  ;;  %v1311_v31 = vmul.f32 0.5, %v3035_v28 }
 0x2c4   :  { %v1307_v32 = vmul.f32 0.5, %v3037_v29  ;;  %v3039_v35 = vpop.eup %3038 }
 0x2c5   :  { %v1312_v33 = vadd.f32 0.5, %v1311_v31 }
 0x2c6   :  { %v1308_v34 = vadd.f32 0.5, %v1307_v32 }
 0x2c7   :  { %v1318_v36 = vmul.f32 %v1312_v33, %v3160_v0  ;;  %v3041_v39 = vpop.eup %3040 }
 0x2c8   :  { %v1319_v37 = vmul.f32 %v3039_v35, %v1308_v34  ;;  %v1315_v40 = vmul.f32 0.5, %v3041_v39 }
 0x2ca   :  { %v1320_v38 = vadd.f32 %v1319_v37, %v1318_v36  ;;  %v1316_v43 = vadd.f32 0.5, %v1315_v40 }
 0x2cc   :  { %3042 = vtanh.f32 %v1320_v38  ;;  %1323 = vst.msk [vmem:[#allocation2] sm:$0xff] %vm411_vm3, %v1320_v38 }
 0x2d3   :  { %v2883_v41 = vpop.f32.mrb[12].mxu1 }
 0x2d4   :  { %v1930_v42 = vpop.f32.mrb[13].mxu1 }
 0x2d5   :  { %2891 = vmatprep.mubr.msk.f32.mxu1 %vm411_vm3, %v1930_v42 }
 0x2d6   :  { %v3043_v44 = vpop.eup %3042  ;;  %2892 = vmatmul.mubr.msk.f32.vlgmr.msra.gmra.mrb[8].mxu1 %vm411_vm3, %v2883_v41 }
 0x2d7   :  { %v1322_v45 = vmul.f32 %v3043_v44, %v1316_v43  ;;  %v2886_v46 = vpop.f32.mrb[14].mxu1  ;;  %2954 = vmatpush3.bf16.msra.mxu1 %v3481_v61 }
 0x2d8   :  { %v1940_v0 = vpop.f32.mrb[15].mxu1 }
 0x2d9   :  { %1324 = vst.msk [vmem:[#allocation4] sm:$0xff] %vm411_vm3, %v1322_v45  ;;  %2894 = vmatprep.mubr.msk.f32.mxu1 %vm411_vm3, %v1940_v0 }
 0x2da   :  { %2895 = vmatmul.mubr.msk.f32.gmra.mrb[10].mxu1 %vm411_vm3, %v2886_v46 }
 0x2db   :  { %2925 = vmatprep.mubr.msk.f32.mxu1 %vm411_vm3, %v2290_v10 }
 0x2de   :  { %2926 = vmatmul.mubr.msk.f32.vlgmr.msra.gmra.mrb[8].mxu1 %vm411_vm3, %v2917_v9 }
 0x2df   :  { %2928 = vmatprep.mubr.msk.f32.mxu1 %vm411_vm3, %v2300_v12 }
 0x2e2   :  { %2929 = vmatmul.mubr.msk.f32.gmra.mrb[10].mxu1 %vm411_vm3, %v2920_v11 }
 0x3b1   :  { %v2927_v47 = vpop.f32.mrb[8].mxu1 }
 0x3b2   :  { %v2959_v48 = vadd.f32 %v2927_v47, %v45_v14  ;;  %v2391_v49 = vpop.f32.mrb[9].mxu1 }
 0x3b3   :  { %v2960_v50 = vadd.f32 %v2391_v49, %v40_v13 }
 0x3b4   :  { %v2418_v51 = vmul.f32 0.5, %v2959_v48 }
 0x3b5   :  { %v2414_v52 = vmul.f32 0.5, %v2960_v50  ;;  %v2930_v53 = vpop.f32.mrb[10].mxu1 }
 0x3b6   :  { %3044 = vtanh.f32 %v2418_v51  ;;  %v2401_v54 = vpop.f32.mrb[11].mxu1  ;;  %v2961_v55 = vadd.f32 %v2930_v53, %v55_v16 }
 0x3b7   :  { %3046 = vtanh.f32 %v2414_v52  ;;  %v2962_v56 = vadd.f32 %v2401_v54, %v50_v25 }
 0x3b8   :  { %3048 = vtanh.f32 %v2961_v55 }
 0x3b9   :  { %v2422_v57 = vmul.f32 0.5, %v2962_v56 }
 0x3bb   :  { %3050 = vtanh.f32 %v2422_v57 }
 0x3c0   :  { %v3045_v58 = vpop.eup %3044 }
 0x3c1   :  { %v3047_v59 = vpop.eup %3046  ;;  %v2420_v60 = vmul.f32 0.5, %v3045_v58 }
 0x3c2   :  { %v2416_v61 = vmul.f32 0.5, %v3047_v59  ;;  %v3049_v1 = vpop.eup %3048 }
 0x3c3   :  { %v2421_v62 = vadd.f32 0.5, %v2420_v60 }
 0x3c4   :  { %v2417_v63 = vadd.f32 0.5, %v2416_v61 }
 0x3c5   :  { %v2427_v2 = vmul.f32 %v3313_v30, %v2421_v62 }
 0x3c6   :  { %v2428_v3 = vmul.f32 %v3049_v1, %v2417_v63 }
 0x3c8   :  { %v2429_v4 = vadd.f32 %v2428_v3, %v2427_v2 }
 0x3ca   :  { %3052 = vtanh.f32 %v2429_v4  ;;  %2433 = vst.msk [vmem:[#allocation2 + $0x8] sm:$0xff] %vm411_vm3, %v2429_v4 }
 0x3cb   :  { %3065 = shalt.err (!%p3062_p4)
}
 0x3cc   :  { %s3066_s22 = scalar_lea.hbm %s3593_s8, 256 }
 0x3cd   :  { %p3067_p5 = scmp.ne.s32.totalorder %s3593_s8, %s3066_s22  ;;  %p3070_p6 = scmp.lt.u32.totalorder %s3066_s22, %s3593_s8 }
 0x3cf   :  { %p3072_p7 = pnand %p3070_p6, %p3067_p5 }
 0x3d1   :  { %3075 = shalt.err (!%p3072_p7)
}
 0x3d2   :  { %s3104_s27 = smov 128   ;;  %s3105_s28 = smov 8   ;;  %v3051_v30 = vpop.eup %3050 }
 0x3d3   :  { %2447 = dma.vmem_to_hbm [thread:$0]  %s2442_s19, 256, %s3593_s8, [#allocation3], %s3104_s27, %s3104_s27, %s3105_s28   ;;  %v2424_v5 = vmul.f32 0.5, %v3051_v30 }
 0x3d4   :  { %s3106_s29 = smov [#allocation4]   ;;  %v3053_v7 = vpop.eup %3052 }
 0x3d5   :  { %s2453_s0 = sshll.u32 %s3106_s29, 4  ;;  %v2425_v6 = vadd.f32 0.5, %v2424_v5  ;;  %s2454_s0 = int_to_ptr.vmem [resolvable:$true] %s2453_s0 }
 0x3d6   :  { %s3076_s2 = scalar_lea.vmem %s2454_s0, 256  ;;  %p3081_p9 = scmp.lt.s32.totalorder %s2454_s0, %s2454_s0 }
 0x3d7   :  { %v2431_v8 = vmul.f32 %v3053_v7, %v2425_v6  ;;  %p3077_p8 = scmp.ne.s32.totalorder %s2454_s0, %s3076_s2  ;;  %p3082_p10 = scmp.lt.s32.totalorder %s3076_s2, %s3076_s2 }
 0x3d9   :  { %2435 = vst.msk [vmem:[#allocation4 + $0x8] sm:$0xff] %vm411_vm3, %v2431_v8  ;;  %p3083_p11 = por %p3082_p10, %p3081_p9 }
 0x3db   :  { %p3084_p12 = pnand %p3083_p11, %p3077_p8 }
 0x3dd   :  { %3087 = shalt.err (!%p3084_p12)
}
 0x3de   :  { %s3088_s8 = scalar_lea.hbm %s3594_s9, 256 }
 0x3df   :  { %p3089_p13 = scmp.ne.s32.totalorder %s3594_s9, %s3088_s8  ;;  %p3092_p0 = scmp.lt.u32.totalorder %s3088_s8, %s3594_s9 }
 0x3e1   :  { %p3094_p1 = pnand %p3092_p0, %p3089_p13 }
 0x3e3   :  { %3097 = shalt.err (!%p3094_p1)
}
 0x3e4   :  { %2459 = dma.vmem_to_hbm [thread:$0]  %s2454_s0, 256, %s3594_s9, [#allocation5], %s3104_s27, %s3104_s27, %s3105_s28  }
 0x3e5   :  { %3098 = dma.done.wait [#allocation3], 256  }
 0x3e6   :  { %3099 = vsyncadd [#allocation3], 4294967040 }
 0x3e7   :  { %3100 = dma.done.wait [#allocation5], 256  }
 0x3e8   :  { %3101 = vsyncadd [#allocation5], 4294967040 }
 0x3e9   :  { %2466 = vsyncpa [#allocation3], 1 }
 0x3ea   :  { %2467 = vsyncpa [#allocation5], 1 }

</bundles_post_ra>
